<compile_context>
chip_gen: v6e
topology: v6e:2x2x1
jax: 0.10.0
libtpu: 0.0.40
codegen_flags: <defaults>
</compile_context>

<pallas_src>
import functools

import jax
import jax.numpy as jnp
from jax.experimental import pallas as pl
from jax.experimental.pallas import tpu as pltpu


def _round_up(x: int, m: int) -> int:
    return ((x + m - 1) // m) * m


def _net_kernel(xT_ref, w1_ref, b1_ref, w2_ref, b2_ref, w3_ref, b3_ref,
                scale_ref, o_ref):
    """Transposed MLP tile: compute in (features, batch_tile) layout so the
    batch axis sits on the 128-lane dimension (feature widths 4/32/32/16 would
    otherwise leave vregs mostly empty)."""
    # Hidden layer 1: ReLU(W1^T @ x^T + b1^T) -> (H1, TB), f32 throughout.
    h = jnp.dot(w1_ref[...], xT_ref[...], preferred_element_type=jnp.float32)
    h = jnp.maximum(h + b1_ref[...], 0.0)
    # Hidden layer 2: ReLU(W2^T @ h + b2^T) -> (H2, TB)
    h = jnp.dot(w2_ref[...], h, preferred_element_type=jnp.float32)
    h = jnp.maximum(h + b2_ref[...], 0.0)
    # Output layer (no activation inside the MLP itself) -> (OUT, TB)
    out = jnp.dot(w3_ref[...], h, preferred_element_type=jnp.float32)
    # tanh + per-row scale ([w_max, a_max] interleaved over the nt*2 rows).
    out = jnp.tanh(out + b3_ref[...]) * scale_ref[...]
    # XLU transpose so the wrapper only needs a (free) reshape, not a second
    # mem-bound transpose pass over the whole output.
    o_ref[...] = out.T.astype(o_ref.dtype)


def _xla_mlp(x, params, scale_vec, nt):
    """Fused-XLA path for small batches (Pallas launch overhead would lose)."""
    w1, b1, w2, b2, w3, b3 = params
    h = jnp.maximum(x @ w1 + b1, 0.0)
    h = jnp.maximum(h @ w2 + b2, 0.0)
    flat = h @ w3 + b3
    return (jnp.tanh(flat) * scale_vec).reshape(x.shape[0], nt, 2)


@functools.partial(jax.jit, static_argnames=("nt", "force_pallas"))
def net_forward(x, params, scale_vec, *, nt, force_pallas=False):
    """x: (B, 4) float32 -> (B, nt, 2) float32 (matches PyTorch Net.forward)."""
    w1, b1, w2, b2, w3, b3 = params            # (in, out) weights, (1, out) biases
    B, in_dim = x.shape
    h1 = w1.shape[1]
    h2 = w2.shape[1]
    out_dim = nt * 2

    # Small-batch dispatch: below ~1K rows the fixed pallas_call / grid-step
    # overhead dominates, so run the plain fused XLA MLP instead.
    if not force_pallas and B < 1024:
        return _xla_mlp(x, params, scale_vec, nt)

    # Batch tile: lane-dense (multiple of 128), large enough to amortize the
    # per-step overhead, and guaranteeing >=2 grid steps when B is large so
    # the "parallel" grid axis can shard across v7x's two TensorCores.
    if B <= 256:
        TILE_B = _round_up(B, 128)
    else:
        TILE_B = min(8192, _round_up((B + 1) // 2, 128))
    B_pad = _round_up(B, TILE_B)
    grid = (B_pad // TILE_B,)

    # Transposed f32 input (4, B_pad): batch on the lane axis.  bf16 would not
    # save HBM bytes here (sublane padding) and f32 keeps the dot portable.
    xT = jnp.pad(x.astype(jnp.float32).T, ((0, 0), (0, B_pad - B)))
    w1T = w1.T.astype(jnp.float32)             # (H1, IN)
    w2T = w2.T.astype(jnp.float32)             # (H2, H1)
    w3T = w3.T.astype(jnp.float32)             # (OUT, H2)
    b1T = b1.T.astype(jnp.float32)             # (H1, 1)
    b2T = b2.T.astype(jnp.float32)             # (H2, 1)
    b3T = b3.T.astype(jnp.float32)             # (OUT, 1)
    scaleT = scale_vec.reshape(out_dim, 1).astype(jnp.float32)   # (OUT, 1)

    const = lambda i: (0, 0)                   # resident weights/biases/scale
    cost = pl.CostEstimate(
        flops=2 * B_pad * (in_dim * h1 + h1 * h2 + h2 * out_dim),
        transcendentals=B_pad * out_dim,
        bytes_accessed=(xT.size * 4
                        + (w1T.size + w2T.size + w3T.size) * 4
                        + (b1T.size + b2T.size + b3T.size + scaleT.size) * 4
                        + out_dim * B_pad * 4),
    )

    out = pl.pallas_call(
        _net_kernel,
        out_shape=jax.ShapeDtypeStruct((B_pad, out_dim), jnp.float32),
        grid=grid,
        in_specs=[
            pl.BlockSpec((in_dim, TILE_B), lambda i: (0, i)),   # xT (pipelined)
            pl.BlockSpec((h1, in_dim), const),                  # W1^T
            pl.BlockSpec((h1, 1), const),                       # b1^T
            pl.BlockSpec((h2, h1), const),                      # W2^T
            pl.BlockSpec((h2, 1), const),                       # b2^T
            pl.BlockSpec((out_dim, h2), const),                 # W3^T
            pl.BlockSpec((out_dim, 1), const),                  # b3^T
            pl.BlockSpec((out_dim, 1), const),                  # scale
        ],
        out_specs=pl.BlockSpec((TILE_B, out_dim), lambda i: (i, 0)),
        compiler_params=pltpu.CompilerParams(
            dimension_semantics=("parallel",),
            vmem_limit_bytes=32 * 1024 * 1024),
        cost_estimate=cost,
    )(xT, w1T, b1T, w2T, b2T, w3T, b3T, scaleT)

    # (B_pad, out_dim) -> (B, nt, 2): slice batch padding; reshape is free and
    # matches torch: flat.reshape(B, nt, 2) interleaves channels column-wise.
    return out[:B].reshape(B, nt, 2)


def init_params(key, input_dim, hiddens, output_dim):
    """Deterministic init mimicking nn.Linear default: U(-1/sqrt(fan_in), +)."""
    dims = [input_dim] + list(hiddens) + [output_dim]
    params = []
    for i in range(len(dims) - 1):
        fan_in, fan_out = dims[i], dims[i + 1]
        key, kw, kb = jax.random.split(key, 3)
        bound = 1.0 / jnp.sqrt(fan_in)
        w = jax.random.uniform(kw, (fan_in, fan_out), jnp.float32,
                               minval=-bound, maxval=bound)
        b = jax.random.uniform(kb, (1, fan_out), jnp.float32,
                               minval=-bound, maxval=bound)
        params.extend([w, b])
    return tuple(params)


if __name__ == "__main__":
    # Synthetic "args"
    nt = 8
    hiddens = [32, 32]
    w_max = 2.0
    a_max = 10.0

    input_dim = 4
    output_dim = nt * 2
    batch = 2

    key = jax.random.PRNGKey(0)
    key, kx = jax.random.split(key)
    x = jax.random.normal(kx, (batch, input_dim), jnp.float32)

    params = init_params(key, input_dim, hiddens, output_dim)

    # Per flat-column scale: flat.reshape(B, nt, 2) interleaves channels, so
    # column 2t -> w_max (controls[..., 0]), column 2t+1 -> a_max ([..., 1]).
    scale_vec = jnp.tile(jnp.array([[w_max, a_max]], jnp.float32), (1, nt))

    # Force the Pallas path so the kernel is exercised at this tiny batch
    # (production small-batch callers take the fused-XLA branch instead).
    out = net_forward(x, params, scale_vec, nt=nt, force_pallas=True)
    jax.block_until_ready(out)
    assert out.shape == (batch, nt, 2)

    # Pure-f32 reference (same math as the PyTorch module).
    w1, b1, w2, b2, w3, b3 = params
    h = jnp.maximum(x @ w1 + b1, 0.0)
    h = jnp.maximum(h @ w2 + b2, 0.0)
    flat = h @ w3 + b3
    ref = (jnp.tanh(flat) * scale_vec).reshape(batch, nt, 2)
    assert jnp.allclose(out, ref, atol=5e-3, rtol=5e-3)

    # The small-batch XLA dispatch path must agree as well.
    out_small = net_forward(x, params, scale_vec, nt=nt)
    jax.block_until_ready(out_small)
    assert jnp.allclose(out_small, ref, atol=5e-3, rtol=5e-3)

    print("KERNEL_OK")
</pallas_src>

<mosaic_0001>
module attributes {stable_mosaic.version = 11 : i64} {
  func.func @_net_kernel(%arg0: i32, %arg1: memref<4x128xf32, #tpu.memory_space<vmem>>, %arg2: memref<32x4xf32, #tpu.memory_space<vmem>>, %arg3: memref<32x1xf32, #tpu.memory_space<vmem>>, %arg4: memref<32x32xf32, #tpu.memory_space<vmem>>, %arg5: memref<32x1xf32, #tpu.memory_space<vmem>>, %arg6: memref<16x32xf32, #tpu.memory_space<vmem>>, %arg7: memref<16x1xf32, #tpu.memory_space<vmem>>, %arg8: memref<16x1xf32, #tpu.memory_space<vmem>>, %arg9: memref<128x16xf32, #tpu.memory_space<vmem>>) attributes {dimension_semantics = [#tpu.dimension_semantics<parallel>], iteration_bounds = array<i64: 1>, scalar_prefetch = 0 : i64, scratch_operands = 0 : i64, tpu.core_type = #tpu.core_type<tc>, window_params = [{transform_indices = @transform_0, window_bounds = array<i64: 4, 128>}, {pipeline_mode = #tpu.pipeline_mode<synchronous>, transform_indices = @transform_1, window_bounds = array<i64: 32, 4>}, {pipeline_mode = #tpu.pipeline_mode<synchronous>, transform_indices = @transform_2, window_bounds = array<i64: 32, 1>}, {pipeline_mode = #tpu.pipeline_mode<synchronous>, transform_indices = @transform_3, window_bounds = array<i64: 32, 32>}, {pipeline_mode = #tpu.pipeline_mode<synchronous>, transform_indices = @transform_4, window_bounds = array<i64: 32, 1>}, {pipeline_mode = #tpu.pipeline_mode<synchronous>, transform_indices = @transform_5, window_bounds = array<i64: 16, 32>}, {pipeline_mode = #tpu.pipeline_mode<synchronous>, transform_indices = @transform_6, window_bounds = array<i64: 16, 1>}, {pipeline_mode = #tpu.pipeline_mode<synchronous>, transform_indices = @transform_7, window_bounds = array<i64: 16, 1>}, {transform_indices = @transform_8, window_bounds = array<i64: 128, 16>}]} {
    %c0 = arith.constant 0 : index
    %c0_0 = arith.constant 0 : index
    %0 = vector.load %arg2[%c0, %c0_0] : memref<32x4xf32, #tpu.memory_space<vmem>>, vector<32x4xf32>
    %c0_1 = arith.constant 0 : index
    %c0_2 = arith.constant 0 : index
    %1 = vector.load %arg1[%c0_1, %c0_2] : memref<4x128xf32, #tpu.memory_space<vmem>>, vector<4x128xf32>
    %cst = arith.constant dense<0.000000e+00> : vector<32x128xf32>
    %2 = tpu.matmul %0, %1, %cst {dimension_numbers = #tpu.dot_dimension_numbers<[1], [0], [0], [1], [0, 0, 1, 1], [], []>} : vector<32x4xf32>, vector<4x128xf32>, vector<32x128xf32> -> vector<32x128xf32>
    %c0_3 = arith.constant 0 : index
    %c0_4 = arith.constant 0 : index
    %3 = vector.load %arg3[%c0_3, %c0_4] : memref<32x1xf32, #tpu.memory_space<vmem>>, vector<32x1xf32>
    %4 = vector.broadcast %3 : vector<32x1xf32> to vector<32x128xf32>
    %5 = arith.addf %2, %4 : vector<32x128xf32>
    %cst_5 = arith.constant 0.000000e+00 : f32
    %6 = vector.broadcast %cst_5 : f32 to vector<32x128xf32>
    %7 = arith.maximumf %5, %6 : vector<32x128xf32>
    %c0_6 = arith.constant 0 : index
    %c0_7 = arith.constant 0 : index
    %8 = vector.load %arg4[%c0_6, %c0_7] : memref<32x32xf32, #tpu.memory_space<vmem>>, vector<32x32xf32>
    %cst_8 = arith.constant dense<0.000000e+00> : vector<32x128xf32>
    %9 = tpu.matmul %8, %7, %cst_8 {dimension_numbers = #tpu.dot_dimension_numbers<[1], [0], [0], [1], [0, 0, 1, 1], [], []>} : vector<32x32xf32>, vector<32x128xf32>, vector<32x128xf32> -> vector<32x128xf32>
    %c0_9 = arith.constant 0 : index
    %c0_10 = arith.constant 0 : index
    %10 = vector.load %arg5[%c0_9, %c0_10] : memref<32x1xf32, #tpu.memory_space<vmem>>, vector<32x1xf32>
    %11 = vector.broadcast %10 : vector<32x1xf32> to vector<32x128xf32>
    %12 = arith.addf %9, %11 : vector<32x128xf32>
    %cst_11 = arith.constant 0.000000e+00 : f32
    %13 = vector.broadcast %cst_11 : f32 to vector<32x128xf32>
    %14 = arith.maximumf %12, %13 : vector<32x128xf32>
    %c0_12 = arith.constant 0 : index
    %c0_13 = arith.constant 0 : index
    %15 = vector.load %arg6[%c0_12, %c0_13] : memref<16x32xf32, #tpu.memory_space<vmem>>, vector<16x32xf32>
    %cst_14 = arith.constant dense<0.000000e+00> : vector<16x128xf32>
    %16 = tpu.matmul %15, %14, %cst_14 {dimension_numbers = #tpu.dot_dimension_numbers<[1], [0], [0], [1], [0, 0, 1, 1], [], []>} : vector<16x32xf32>, vector<32x128xf32>, vector<16x128xf32> -> vector<16x128xf32>
    %c0_15 = arith.constant 0 : index
    %c0_16 = arith.constant 0 : index
    %17 = vector.load %arg7[%c0_15, %c0_16] : memref<16x1xf32, #tpu.memory_space<vmem>>, vector<16x1xf32>
    %18 = vector.broadcast %17 : vector<16x1xf32> to vector<16x128xf32>
    %19 = arith.addf %16, %18 : vector<16x128xf32>
    %20 = math.tanh %19 : vector<16x128xf32>
    %c0_17 = arith.constant 0 : index
    %c0_18 = arith.constant 0 : index
    %21 = vector.load %arg8[%c0_17, %c0_18] : memref<16x1xf32, #tpu.memory_space<vmem>>, vector<16x1xf32>
    %22 = vector.broadcast %21 : vector<16x1xf32> to vector<16x128xf32>
    %23 = arith.mulf %20, %22 : vector<16x128xf32>
    %24 = tpu.transpose %23, [1, 0] : vector<16x128xf32> -> vector<128x16xf32>
    %c0_19 = arith.constant 0 : index
    %c0_20 = arith.constant 0 : index
    %25 = vector.load %arg9[%c0_19, %c0_20] : memref<128x16xf32, #tpu.memory_space<vmem>>, vector<128x16xf32>
    tpu.vector_store %arg9[%c0_19, %c0_20], %24 {strides = array<i32>} : memref<128x16xf32, #tpu.memory_space<vmem>>, vector<128x16xf32>,
    return
  }
  func.func @transform_0(%arg0: i32) -> (i32, i32) {
    %c0_i32 = arith.constant 0 : i32
    %c0_i32_0 = arith.constant 0 : i32
    return %c0_i32, %arg0 : i32, i32
  }
  func.func @transform_1(%arg0: i32) -> (i32, i32) {
    %c0_i32 = arith.constant 0 : i32
    %c0_i32_0 = arith.constant 0 : i32
    %c0_i32_1 = arith.constant 0 : i32
    return %c0_i32, %c0_i32_0 : i32, i32
  }
  func.func @transform_2(%arg0: i32) -> (i32, i32) {
    %c0_i32 = arith.constant 0 : i32
    %c0_i32_0 = arith.constant 0 : i32
    %c0_i32_1 = arith.constant 0 : i32
    return %c0_i32, %c0_i32_0 : i32, i32
  }
  func.func @transform_3(%arg0: i32) -> (i32, i32) {
    %c0_i32 = arith.constant 0 : i32
    %c0_i32_0 = arith.constant 0 : i32
    %c0_i32_1 = arith.constant 0 : i32
    return %c0_i32, %c0_i32_0 : i32, i32
  }
  func.func @transform_4(%arg0: i32) -> (i32, i32) {
    %c0_i32 = arith.constant 0 : i32
    %c0_i32_0 = arith.constant 0 : i32
    %c0_i32_1 = arith.constant 0 : i32
    return %c0_i32, %c0_i32_0 : i32, i32
  }
  func.func @transform_5(%arg0: i32) -> (i32, i32) {
    %c0_i32 = arith.constant 0 : i32
    %c0_i32_0 = arith.constant 0 : i32
    %c0_i32_1 = arith.constant 0 : i32
    return %c0_i32, %c0_i32_0 : i32, i32
  }
  func.func @transform_6(%arg0: i32) -> (i32, i32) {
    %c0_i32 = arith.constant 0 : i32
    %c0_i32_0 = arith.constant 0 : i32
    %c0_i32_1 = arith.constant 0 : i32
    return %c0_i32, %c0_i32_0 : i32, i32
  }
  func.func @transform_7(%arg0: i32) -> (i32, i32) {
    %c0_i32 = arith.constant 0 : i32
    %c0_i32_0 = arith.constant 0 : i32
    %c0_i32_1 = arith.constant 0 : i32
    return %c0_i32, %c0_i32_0 : i32, i32
  }
  func.func @transform_8(%arg0: i32) -> (i32, i32) {
    %c0_i32 = arith.constant 0 : i32
    %c0_i32_0 = arith.constant 0 : i32
    return %arg0, %c0_i32 : i32, i32
  }
}

</mosaic_0001>

<bundles_post_ra>
// kernel: net_forward.1
= control target key start
LH: loop header
LB: loop body
LE: loop exit
PB: predicated region body
PF: predicated region fallthrough
CT: control target
= control target key end

     0   :  { %vm71_vm0 = vcmask 1043456   ;;  %vm58_vm1 = vcmask 31744   ;;  %v529_v3 = vmov 0   ;;  %vm192_vm2 = vcmask 261120   ;;  %s718_s0 = inlined_call_operand.vmem [shape: f32[4,128], index: 0, kind: input, shape index: {}]   ;;  %s719_s1 = inlined_call_operand.vmem [shape: f32[32,4], index: 1, kind: input, shape index: {}]   ;;  %s720_s2 = inlined_call_operand.vmem [shape: f32[32,1], index: 2, kind: input, shape index: {}]   ;;  %s721_s4 = inlined_call_operand.vmem [shape: f32[32,1], index: 4, kind: input, shape index: {}]   ;;  %s722_s6 = inlined_call_operand.vmem [shape: f32[16,1], index: 6, kind: input, shape index: {}]   ;;  %s723_s7 = inlined_call_operand.vmem [shape: f32[16,1], index: 7, kind: input, shape index: {}]   ;;  %s724_s3 = inlined_call_operand.vmem [shape: f32[32,32], index: 3, kind: input, shape index: {}]   ;;  %s725_s5 = inlined_call_operand.vmem [shape: f32[16,32], index: 5, kind: input, shape index: {}]   ;;  %s726_s8 = inlined_call_operand.vmem [shape: f32[128,16], index: 8, kind: output, shape index: {}]  }
   0x1   :  { %v33_v0 = vld [vmem:[%s718_s0] sm:$0xf]  ;;  %v30_v2 = vld [vmem:[%s719_s1 + $0x8] sm:$0xff]  ;;  %523 = vset.pattern.permute.xlu0 %v529_v3  ;;  %524 = vset.pattern.permute.xlu1 %v529_v3  ;;  %v31_v4 = vld [vmem:[%s719_s1 + $0x10] sm:$0xff]  ;;  %vm437_vm3 = vcmask 130048  }
   0x2   :  { %v29_v1 = vld [vmem:[%s719_s1] sm:$0xff]  ;;  %488 = vmatprep.subr.msk.mxu0 %vm71_vm0, %v33_v0  ;;  %v37_v5 = vld [vmem:[%s720_s2 + $0x18] sm:$0xff]  ;;  %v35_v6 = vld [vmem:[%s720_s2 + $0x8] sm:$0xff] }
   0x3   :  { %490 = vmatprep.mubr.msk.f32.mxu0 %vm58_vm1, %v29_v1  ;;  %489 = vmatpush3.msk.msra.mxu0 %vm71_vm0, %v33_v0  ;;  %v36_v7 = vld [vmem:[%s720_s2 + $0x10] sm:$0xff]  ;;  %v32_v8 = vld [vmem:[%s719_s1 + $0x18] sm:$0xff]  ;;  %v34_v9 = vld [vmem:[%s720_s2] sm:$0xff] }
   0x4   :  { %55 = vperm.xlu0 %523, %v37_v5   ;;  %491 = vmatmul.mubr.msk.f32.vlgmr.msra.gmra.mxu0 %vm58_vm1, %v30_v2  ;;  %v171_v10 = vld [vmem:[%s721_s4 + $0x18] sm:$0xff]  ;;  %v170_v11 = vld [vmem:[%s721_s4 + $0x10] sm:$0xff]  ;;  %v169_v12 = vld [vmem:[%s721_s4 + $0x8] sm:$0xff] }
   0x5   :  { %45 = vperm.xlu1 %524, %v35_v6   ;;  %493 = vmatprep.mubr.msk.f32.mxu0 %vm58_vm1, %v31_v4  ;;  %v168_v13 = vld [vmem:[%s721_s4] sm:$0xff]  ;;  %v297_v15 = vld [vmem:[%s722_s6 + $0x8] sm:$0xff]  ;;  %v166_v36 = vld [vmem:[%s724_s3 + $0x10] sm:$0xff] }
   0x6   :  { %v296_v14 = vld [vmem:[%s722_s6] sm:$0xff]  ;;  %v392_v17 = vld [vmem:[%s723_s7 + $0x8] sm:$0xff]  ;;  %v167_v37 = vld [vmem:[%s724_s3 + $0x18] sm:$0xff] }
   0x7   :  { %v391_v16 = vld [vmem:[%s723_s7] sm:$0xff]  ;;  %v165_v35 = vld [vmem:[%s724_s3 + $0x8] sm:$0xff] }
   0x8   :  { %50 = vperm.xlu0 %523, %v36_v7   ;;  %494 = vmatmul.mubr.msk.f32.gmra.mxu0 %vm58_vm1, %v32_v8  ;;  %v164_v18 = vld [vmem:[%s724_s3] sm:$0xff]  ;;  %v295_v55 = vld [vmem:[%s725_s5 + $0x8] sm:$0xff] }
   0x9   :  { %40 = vperm.xlu1 %524, %v34_v9   ;;  %504 = vmatprep.mubr.msk.f32.mxu1 %vm192_vm2, %v164_v18  ;;  %v294_v38 = vld [vmem:[%s725_s5] sm:$0xff] }
   0xa   :  { %518 = vmatprep.mubr.msk.f32.mxu0 %vm192_vm2, %v294_v38 }
   0xc   :  { %189 = vperm.xlu0 %523, %v171_v10  }
   0xd   :  { %184 = vperm.xlu1 %524, %v170_v11  }
  0x10   :  { %179 = vperm.xlu0 %523, %v169_v12  }
  0x11   :  { %174 = vperm.xlu1 %524, %v168_v13  }
  0x14   :  { %300 = vperm.xlu0 %523, %v296_v14  }
  0x15   :  { %305 = vperm.xlu1 %524, %v297_v15  }
  0x18   :  { %395 = vperm.xlu0 %523, %v391_v16  }
  0x19   :  { %400 = vperm.xlu1 %524, %v392_v17  }
  0x7f   :  { %v56_v19 = vpop.permute.xlu0 %55 }
  0x80   :  { %v46_v21 = vpop.permute.xlu1 %45 }
  0x83   :  { %v51_v25 = vpop.permute.xlu0 %50 }
  0x84   :  { %v41_v30 = vpop.permute.xlu1 %40 }
  0x87   :  { %v190_v39 = vpop.permute.xlu0 %189 }
  0x88   :  { %v185_v41 = vpop.permute.xlu1 %184 }
  0x8b   :  { %v180_v45 = vpop.permute.xlu0 %179 }
  0x8c   :  { %v175_v50 = vpop.permute.xlu1 %174 }
  0x8f   :  { %v301_v57 = vpop.permute.xlu0 %300 }
  0x90   :  { %v306_v58 = vpop.permute.xlu1 %305 }
  0x93   :  { %v396_v63 = vpop.permute.xlu0 %395 }
  0x94   :  { %v401_v2 = vpop.permute.xlu1 %400 }
  0xc4   :  { %v492_v20 = vpop.f32.mrf.mxu0 }
  0xc5   :  { %v147_v27 = vadd.f32 %v492_v20, %v46_v21 }
  0xc6   :  { %v141_v22 = vpop.f32.mrf.mxu0 }
  0xc7   :  { %v142_v31 = vadd.f32 %v141_v22, %v41_v30  ;;  %v161_v33 = vmax.f32 %v147_v27, 0.0 }
  0xc8   :  { %v495_v23 = vpop.f32.mrf.mxu0 }
  0xc9   :  { %v157_v24 = vadd.f32 %v495_v23, %v56_v19  ;;  %v160_v34 = vmax.f32 %v142_v31, 0.0 }
  0xca   :  { %v151_v26 = vpop.f32.mrf.mxu0 }
  0xcb   :  { %v163_v28 = vmax.f32 %v157_v24, 0.0  ;;  %v152_v29 = vadd.f32 %v151_v26, %v51_v25 }
  0xcd   :  { %v162_v32 = vmax.f32 %v152_v29, 0.0  ;;  %496 = vmatprep.subr.mxu1 %v163_v28 }
  0xce   :  { %497 = vmatpush3.msra.mxu1 %v163_v28 }
  0xcf   :  { %498 = vmatprep.subr.mxu1 %v162_v32 }
  0xd0   :  { %499 = vmatpush3.msra.mxu1 %v162_v32 }
  0xd1   :  { %500 = vmatprep.subr.mxu1 %v161_v33 }
  0xd2   :  { %501 = vmatpush3.msra.mxu1 %v161_v33 }
  0xd3   :  { %502 = vmatprep.subr.mxu1 %v160_v34 }
  0xd4   :  { %503 = vmatpush3.msra.mxu1 %v160_v34 }
  0xd5   :  { %505 = vmatmul.mubr.msk.f32.vlgmr.msra.gmra.mxu1 %vm192_vm2, %v165_v35 }
  0xd6   :  { %507 = vmatprep.mubr.msk.f32.mxu1 %vm192_vm2, %v166_v36 }
  0xd9   :  { %508 = vmatmul.mubr.msk.f32.gmra.mxu1 %vm192_vm2, %v167_v37 }
 0x195   :  { %v506_v40 = vpop.f32.mrf.mxu1 }
 0x196   :  { %v277_v47 = vadd.f32 %v506_v40, %v180_v45 }
 0x197   :  { %v271_v42 = vpop.f32.mrf.mxu1 }
 0x198   :  { %v272_v51 = vadd.f32 %v271_v42, %v175_v50  ;;  %v291_v53 = vmax.f32 %v277_v47, 0.0 }
 0x199   :  { %v509_v43 = vpop.f32.mrf.mxu1 }
 0x19a   :  { %v287_v44 = vadd.f32 %v509_v43, %v190_v39  ;;  %v290_v54 = vmax.f32 %v272_v51, 0.0 }
 0x19b   :  { %v281_v46 = vpop.f32.mrf.mxu1 }
 0x19c   :  { %v293_v48 = vmax.f32 %v287_v44, 0.0  ;;  %v282_v49 = vadd.f32 %v281_v46, %v185_v41 }
 0x19e   :  { %v292_v52 = vmax.f32 %v282_v49, 0.0  ;;  %510 = vmatprep.subr.mxu0 %v293_v48 }
 0x19f   :  { %511 = vmatpush3.msra.mxu0 %v293_v48 }
 0x1a0   :  { %512 = vmatprep.subr.mxu0 %v292_v52 }
 0x1a1   :  { %513 = vmatpush3.msra.mxu0 %v292_v52 }
 0x1a2   :  { %514 = vmatprep.subr.mxu0 %v291_v53 }
 0x1a3   :  { %515 = vmatpush3.msra.mxu0 %v291_v53 }
 0x1a4   :  { %516 = vmatprep.subr.mxu0 %v290_v54 }
 0x1a5   :  { %517 = vmatpush3.msra.mxu0 %v290_v54 }
 0x1a6   :  { %519 = vmatmul.mubr.msk.f32.vlgmr.msra.gmra.mxu0 %vm192_vm2, %v295_v55 }
 0x266   :  { %v520_v56 = vpop.f32.mrf.mxu0 }
 0x267   :  { %v386_v60 = vadd.f32 %v520_v56, %v306_v58 }
 0x268   :  { %v380_v59 = vpop.f32.mrf.mxu0 }
 0x269   :  { %v381_v61 = vadd.f32 %v380_v59, %v301_v57 }
 0x26b   :  { %525 = vtanh.f32 %v381_v61 }
 0x26c   :  { %527 = vtanh.f32 %v386_v60 }
 0x278   :  { %v526_v62 = vpop.eup %525 }
 0x279   :  { %v403_v0 = vmul.f32 %v526_v62, %v396_v63  ;;  %v528_v1 = vpop.eup %527 }
 0x27a   :  { %v404_v3 = vmul.f32 %v528_v1, %v401_v2 }
 0x27b   :  { %405 = vxpose.xlu0.b32.start [1/2] (short) %v403_v0, 128 }
 0x27f   :  { %406 = vxpose.xlu0.b32.end [2/2] (short) %v404_v3, 128 }
 0x2f7   :  { %v421_v4 = vpop.trf.xlu0 }
 0x2f8   :  { %438 = vst.msk [vmem:[%s726_s8] sm:$0xff] %vm437_vm3, %v421_v4 }
 0x2fb   :  { %v422_v5 = vpop.trf.xlu0 }
 0x2fc   :  { %439 = vst.msk [vmem:[%s726_s8 + $0x8] sm:$0xff] %vm437_vm3, %v422_v5 }
 0x2ff   :  { %v423_v6 = vpop.trf.xlu0 }
 0x300   :  { %440 = vst.msk [vmem:[%s726_s8 + $0x10] sm:$0xff] %vm437_vm3, %v423_v6 }
 0x303   :  { %v424_v7 = vpop.trf.xlu0 }
 0x304   :  { %441 = vst.msk [vmem:[%s726_s8 + $0x18] sm:$0xff] %vm437_vm3, %v424_v7 }
 0x307   :  { %v425_v8 = vpop.trf.xlu0 }
 0x308   :  { %442 = vst.msk [vmem:[%s726_s8 + $0x20] sm:$0xff] %vm437_vm3, %v425_v8 }
 0x30b   :  { %v426_v9 = vpop.trf.xlu0 }
 0x30c   :  { %443 = vst.msk [vmem:[%s726_s8 + $0x28] sm:$0xff] %vm437_vm3, %v426_v9 }
 0x30f   :  { %v427_v10 = vpop.trf.xlu0 }
 0x310   :  { %444 = vst.msk [vmem:[%s726_s8 + $0x30] sm:$0xff] %vm437_vm3, %v427_v10 }
 0x313   :  { %v428_v11 = vpop.trf.xlu0 }
 0x314   :  { %445 = vst.msk [vmem:[%s726_s8 + $0x38] sm:$0xff] %vm437_vm3, %v428_v11 }
 0x317   :  { %v429_v12 = vpop.trf.xlu0 }
 0x318   :  { %446 = vst.msk [vmem:[%s726_s8 + $0x40] sm:$0xff] %vm437_vm3, %v429_v12 }
 0x31b   :  { %v430_v13 = vpop.trf.xlu0 }
 0x31c   :  { %447 = vst.msk [vmem:[%s726_s8 + $0x48] sm:$0xff] %vm437_vm3, %v430_v13 }
 0x31f   :  { %v431_v14 = vpop.trf.xlu0 }
 0x320   :  { %448 = vst.msk [vmem:[%s726_s8 + $0x50] sm:$0xff] %vm437_vm3, %v431_v14 }
 0x323   :  { %v432_v15 = vpop.trf.xlu0 }
 0x324   :  { %449 = vst.msk [vmem:[%s726_s8 + $0x58] sm:$0xff] %vm437_vm3, %v432_v15 }
 0x327   :  { %v433_v16 = vpop.trf.xlu0 }
 0x328   :  { %450 = vst.msk [vmem:[%s726_s8 + $0x60] sm:$0xff] %vm437_vm3, %v433_v16 }
 0x32b   :  { %v434_v17 = vpop.trf.xlu0 }
 0x32c   :  { %451 = vst.msk [vmem:[%s726_s8 + $0x68] sm:$0xff] %vm437_vm3, %v434_v17 }
 0x32f   :  { %v435_v18 = vpop.trf.xlu0 }
 0x330   :  { %452 = vst.msk [vmem:[%s726_s8 + $0x70] sm:$0xff] %vm437_vm3, %v435_v18 }
 0x333   :  { %v436_v19 = vpop.trf.xlu0 }
 0x334   :  { %453 = vst.msk [vmem:[%s726_s8 + $0x78] sm:$0xff] %vm437_vm3, %v436_v19 }

</bundles_post_ra>
